<compile_context>
chip_gen: v5e
topology: v5e:2x2
jax: 0.10.0
libtpu: 0.0.40
codegen_flags: <defaults>
</compile_context>

<pallas_src>
import functools

import jax
import jax.numpy as jnp
from jax import lax
from jax.experimental import pallas as pl
from jax.experimental.pallas import tpu as pltpu

_LANES = 128
_GROUP_ROWS = 64   # channel rows folded per register-resident group (<= ~16 vregs live)


def _group_reduce(x_ref, b, c0, g, *, n_full, rem, needs_mask, s_off, s_total,
                  lane_iota):
    """Max / f32-sum over the lane (spatial) axis of x_ref[b, c0:c0+g, :].

    Streams the spatial extent in 128-lane chunks; the element-wise fold
    partials ((g,128) max in input dtype, (g,128) sum in f32) stay in vregs and
    only one cross-lane reduce per accumulator is issued per group.
    Returns (gmax: (g,) input dtype, gsum: (g,) float32).
    """
    pmax = None
    psum = None
    for i in range(n_full):                                     # static unroll
        v = x_ref[b, pl.ds(c0, g), pl.ds(i * _LANES, _LANES)]   # (g, 128)
        if needs_mask:
            valid = (s_off + i * _LANES) + lane_iota < s_total  # (1, 128)
            vm = jnp.where(valid, v, jnp.array(-jnp.inf, dtype=v.dtype))
            vs = jnp.where(valid, v.astype(jnp.float32), 0.0)
        else:
            vm = v
            vs = v.astype(jnp.float32)
        pmax = vm if pmax is None else jnp.maximum(pmax, vm)
        psum = vs if psum is None else psum + vs

    gmax = None
    gsum = None
    if pmax is not None:
        gmax = jnp.max(pmax, axis=-1)        # single XLU reduce per group
        gsum = jnp.sum(psum, axis=-1)
    if rem > 0:                              # tail lanes when TS == S, S % 128 != 0
        vr = x_ref[b, pl.ds(c0, g), pl.ds(n_full * _LANES, rem)]   # (g, rem) static
        rmax = jnp.max(vr, axis=-1)
        rsum = jnp.sum(vr.astype(jnp.float32), axis=-1)
        gmax = rmax if gmax is None else jnp.maximum(gmax, rmax)
        gsum = rsum if gsum is None else gsum + rsum
    return gmax, gsum


def _pool_kernel_single(x_ref, out_ref, *, tb, groups, n_full, rem, inv_s):
    """Single spatial step: no running scratch, write max / mean directly."""
    def per_batch(b):
        for c0, g in groups:
            gmax, gsum = _group_reduce(
                x_ref, b, c0, g, n_full=n_full, rem=rem, needs_mask=False,
                s_off=None, s_total=None, lane_iota=None)
            out_ref[b, 0, pl.ds(c0, g)] = gmax.astype(out_ref.dtype)
            out_ref[b, 1, pl.ds(c0, g)] = (gsum * inv_s).astype(out_ref.dtype)

    if tb <= 8:
        for b in range(tb):
            per_batch(b)
    else:
        def body(b, carry):
            per_batch(b)
            return carry
        lax.fori_loop(0, tb, body, 0)


def _pool_kernel_multi(x_ref, out_ref, max_acc, sum_acc, *, tb, groups, n_full,
                       ts, s_total, needs_mask, inv_s):
    """Spatial reduction split over the (last, 'arbitrary') grid axis."""
    s = pl.program_id(1)

    @pl.when(s == 0)
    def _init():
        max_acc[...] = jnp.full(max_acc.shape, -jnp.inf, dtype=jnp.float32)
        sum_acc[...] = jnp.zeros(sum_acc.shape, dtype=jnp.float32)

    s_off = s * ts
    lane_iota = (lax.broadcasted_iota(jnp.int32, (1, _LANES), 1)
                 if needs_mask else None)

    def per_batch(b):
        for c0, g in groups:
            gmax, gsum = _group_reduce(
                x_ref, b, c0, g, n_full=n_full, rem=0, needs_mask=needs_mask,
                s_off=s_off, s_total=s_total, lane_iota=lane_iota)
            cur_max = max_acc[b, 0, pl.ds(c0, g)]
            max_acc[b, 0, pl.ds(c0, g)] = jnp.maximum(cur_max,
                                                      gmax.astype(jnp.float32))
            cur_sum = sum_acc[b, 0, pl.ds(c0, g)]
            sum_acc[b, 0, pl.ds(c0, g)] = cur_sum + gsum

    if tb <= 8:
        for b in range(tb):
            per_batch(b)
    else:
        def body(b, carry):
            per_batch(b)
            return carry
        lax.fori_loop(0, tb, body, 0)

    @pl.when(s == pl.num_programs(1) - 1)
    def _finalize():
        out_ref[:, 0, :] = max_acc[:, 0, :].astype(out_ref.dtype)
        out_ref[:, 1, :] = (sum_acc[:, 0, :] * inv_s).astype(out_ref.dtype)


def _budgets(tile_bytes, vmem_limit_bytes):
    """Generation-gated streaming-block / scoped-VMEM budgets."""
    try:
        cap = int(pltpu.get_tpu_info().vmem_capacity_bytes)
    except Exception:
        cap = 64 * 1024 * 1024
    big_vmem = cap >= 96 * 1024 * 1024            # v5e / v6e (128 MiB) vs v7x (64 MiB)
    if tile_bytes is None:
        tile_bytes = (12 if big_vmem else 6) * 1024 * 1024
    if vmem_limit_bytes is None:
        vmem_limit_bytes = (64 if big_vmem else 40) * 1024 * 1024
    return tile_bytes, vmem_limit_bytes


def adaptive_concat_pool2d(x, *, tile_bytes=None, vmem_limit_bytes=None):
    """x: (N, C, H, W) -> (N, 2*C, 1, 1) == torch.cat([maxpool, avgpool], 1)."""
    N, C, H, W = x.shape
    S = H * W
    itemsize = jnp.dtype(x.dtype).itemsize
    tile_bytes, vmem_limit_bytes = _budgets(tile_bytes, vmem_limit_bytes)
    # TODO(synk): integer inputs would need integer max/avg semantics.

    # ---- spatial tile TS (picked first; 128-multiple unless full extent) ----
    single_step = (C * S * itemsize <= tile_bytes) or (S <= _LANES)
    if single_step:
        TS = S                               # full extent: always a legal last dim
        s_steps, needs_mask = 1, False
        n_full, rem = S // _LANES, S % _LANES
    else:
        ts_cap = max(_LANES,
                     min(8192, (tile_bytes // (C * itemsize)) // _LANES * _LANES))
        TS = ts_cap
        t = ts_cap                           # prefer a nearby TS that divides S
        while t >= max(_LANES, ts_cap - 16 * _LANES):
            if S % t == 0:
                TS = t
                break
            t -= _LANES
        s_steps = pl.cdiv(S, TS)
        needs_mask = (s_steps * TS != S)     # mask padded lanes of the last tile
        n_full, rem = TS // _LANES, 0

    # ---- batch tile TB (from the remaining budget; >=2 tiles for v7x megacore) ----
    block_row_bytes = C * TS * itemsize
    TB = max(1, min(N, tile_bytes // max(1, block_row_bytes)))
    if N >= 2:
        TB = min(TB, -(-N // 2))
    if N % TB:                               # prefer TB | N (no padded batch rows)
        for d in range(TB, 0, -1):
            if N % d == 0:
                if 2 * d >= TB:
                    TB = d
                break
    b_steps = pl.cdiv(N, TB)

    # ---- channel groups kept register-resident inside the kernel ----
    G = min(C, _GROUP_ROWS)
    groups = tuple((c0, min(G, C - c0)) for c0 in range(0, C, G))

    x3 = x.reshape(N, C, S)
    out_shape = jax.ShapeDtypeStruct((N, 2, C), x.dtype)
    inv_s = 1.0 / float(S)

    if s_steps == 1:
        kernel = functools.partial(_pool_kernel_single, tb=TB, groups=groups,
                                   n_full=n_full, rem=rem, inv_s=inv_s)
        grid_spec = pltpu.PrefetchScalarGridSpec(
            num_scalar_prefetch=0,
            grid=(b_steps,),
            in_specs=[pl.BlockSpec((TB, C, TS), lambda b: (b, 0, 0))],
            out_specs=pl.BlockSpec((TB, 2, C), lambda b: (b, 0, 0)))
        dim_sem = ("parallel",)
    else:
        kernel = functools.partial(_pool_kernel_multi, tb=TB, groups=groups,
                                   n_full=n_full, ts=TS, s_total=S,
                                   needs_mask=needs_mask, inv_s=inv_s)
        grid_spec = pltpu.PrefetchScalarGridSpec(
            num_scalar_prefetch=0,
            grid=(b_steps, s_steps),
            in_specs=[pl.BlockSpec((TB, C, TS), lambda b, s: (b, 0, s))],
            out_specs=pl.BlockSpec((TB, 2, C), lambda b, s: (b, 0, 0)),
            scratch_shapes=[pltpu.VMEM((TB, 1, C), jnp.float32),   # running max
                            pltpu.VMEM((TB, 1, C), jnp.float32)])  # running sum
        dim_sem = ("parallel", "arbitrary")

    out = pl.pallas_call(
        kernel,
        out_shape=out_shape,
        grid_spec=grid_spec,
        compiler_params=pltpu.CompilerParams(
            dimension_semantics=dim_sem,
            vmem_limit_bytes=vmem_limit_bytes),
    )(x3)

    # (N, 2, C) row-major == torch.cat([max, avg], dim=1); reshape is free.
    return out.reshape(N, 2 * C, 1, 1)


def _reference(x):
    mx = jnp.max(x, axis=(2, 3))
    av = jnp.mean(x.astype(jnp.float32), axis=(2, 3)).astype(x.dtype)
    return jnp.concatenate([mx, av], axis=1)[:, :, None, None]


if __name__ == "__main__":
    key = jax.random.PRNGKey(0)
    ks = jax.random.split(key, 4)

    def check(x, tile_bytes=None, atol=1e-5, rtol=1e-5):
        out = jax.block_until_ready(
            adaptive_concat_pool2d(x, tile_bytes=tile_bytes))
        ref = _reference(x)
        assert out.shape == ref.shape, (out.shape, ref.shape)
        assert jnp.allclose(out.astype(jnp.float32), ref.astype(jnp.float32),
                            atol=atol, rtol=rtol)

    # 1) Single-step path, small spec-sized input (S=256 -> two 128-lane chunks).
    check(jax.random.normal(ks[0], (2, 4, 16, 16), dtype=jnp.float32))
    # 2) Multi-spatial-step accumulation (tiny budget -> TS=512, 2 spatial tiles).
    check(jax.random.normal(ks[1], (4, 8, 32, 32), dtype=jnp.float32),
          tile_bytes=16 * 1024)
    # 3) Non-128-multiple spatial extent, single step (7x7 remainder path).
    check(jax.random.normal(ks[2], (2, 16, 7, 7), dtype=jnp.float32))
    # 4) Non-128-multiple S with spatial tiling -> masked padded tail tile.
    check(jax.random.normal(ks[3], (2, 8, 20, 20), dtype=jnp.float32),
          tile_bytes=8 * 1024)
    # 5) bf16 input: running max in bf16, mean accumulated in f32.
    check(jax.random.normal(ks[0], (2, 16, 8, 8), dtype=jnp.bfloat16),
          atol=2e-2, rtol=2e-2)

    print("KERNEL_OK")
</pallas_src>

<mosaic_0001>
module attributes {stable_mosaic.version = 11 : i64} {
  func.func @_pool_kernel_single(%arg0: i32, %arg1: memref<1x4x256xf32, #tpu.memory_space<vmem>>, %arg2: memref<1x2x4xf32, #tpu.memory_space<vmem>>) attributes {dimension_semantics = [#tpu.dimension_semantics<parallel>], iteration_bounds = array<i64: 2>, scalar_prefetch = 0 : i64, scratch_operands = 0 : i64, tpu.core_type = #tpu.core_type<tc>, window_params = [{transform_indices = @transform_0, window_bounds = array<i64: 1, 4, 256>}, {transform_indices = @transform_1, window_bounds = array<i64: 1, 2, 4>}]} {
    %c0 = arith.constant 0 : index
    %c0_0 = arith.constant 0 : index
    %c0_1 = arith.constant 0 : index
    %0 = vector.load %arg1[%c0, %c0_0, %c0_1] : memref<1x4x256xf32, #tpu.memory_space<vmem>>, vector<1x4x128xf32>
    %1 = vector.shape_cast %0 : vector<1x4x128xf32> to vector<4x128xf32>
    %c0_2 = arith.constant 0 : index
    %c0_3 = arith.constant 0 : index
    %c128 = arith.constant 128 : index
    %2 = vector.load %arg1[%c0_2, %c0_3, %c128] : memref<1x4x256xf32, #tpu.memory_space<vmem>>, vector<1x4x128xf32>
    %3 = vector.shape_cast %2 : vector<1x4x128xf32> to vector<4x128xf32>
    %4 = arith.maximumf %1, %3 : vector<4x128xf32>
    %5 = arith.addf %1, %3 : vector<4x128xf32>
    %cst = arith.constant dense<0xFF800000> : vector<4xf32>
    %6 = vector.multi_reduction <maximumf>, %4, %cst [1] : vector<4x128xf32> to vector<4xf32>
    %cst_4 = arith.constant dense<0.000000e+00> : vector<4xf32>
    %7 = vector.multi_reduction <add>, %5, %cst_4 [1] : vector<4x128xf32> to vector<4xf32>
    %c0_5 = arith.constant 0 : index
    %c0_6 = arith.constant 0 : index
    %c0_7 = arith.constant 0 : index
    %8 = vector.load %arg2[%c0_5, %c0_6, %c0_7] : memref<1x2x4xf32, #tpu.memory_space<vmem>>, vector<1x1x4xf32>
    %9 = vector.shape_cast %8 : vector<1x1x4xf32> to vector<4xf32>
    %10 = vector.shape_cast %6 : vector<4xf32> to vector<1x1x4xf32>
    tpu.vector_store %arg2[%c0_5, %c0_6, %c0_7], %10 {strides = array<i32>} : memref<1x2x4xf32, #tpu.memory_space<vmem>>, vector<1x1x4xf32>,
    %cst_8 = arith.constant 3.906250e-03 : f32
    %11 = vector.broadcast %cst_8 : f32 to vector<4xf32>
    %12 = arith.mulf %7, %11 : vector<4xf32>
    %c0_9 = arith.constant 0 : index
    %c1 = arith.constant 1 : index
    %c0_10 = arith.constant 0 : index
    %13 = vector.load %arg2[%c0_9, %c1, %c0_10] : memref<1x2x4xf32, #tpu.memory_space<vmem>>, vector<1x1x4xf32>
    %14 = vector.shape_cast %13 : vector<1x1x4xf32> to vector<4xf32>
    %15 = vector.shape_cast %12 : vector<4xf32> to vector<1x1x4xf32>
    tpu.vector_store %arg2[%c0_9, %c1, %c0_10], %15 {strides = array<i32>} : memref<1x2x4xf32, #tpu.memory_space<vmem>>, vector<1x1x4xf32>,
    return
  }
  func.func @transform_0(%arg0: i32) -> (i32, i32, i32) {
    %c0_i32 = arith.constant 0 : i32
    %c0_i32_0 = arith.constant 0 : i32
    %c0_i32_1 = arith.constant 0 : i32
    return %arg0, %c0_i32, %c0_i32_0 : i32, i32, i32
  }
  func.func @transform_1(%arg0: i32) -> (i32, i32, i32) {
    %c0_i32 = arith.constant 0 : i32
    %c0_i32_0 = arith.constant 0 : i32
    %c0_i32_1 = arith.constant 0 : i32
    return %arg0, %c0_i32, %c0_i32_0 : i32, i32, i32
  }
}

</mosaic_0001>

<bundles_post_ra>
// kernel: tpu_custom_call.1
= control target key start
LH: loop header
LB: loop body
LE: loop exit
PB: predicated region body
PF: predicated region fallthrough
CT: control target
= control target key end

     0   :  { %6 = vsyncpa [#allocation3], 0  ;;  %s540_s0 = inlined_call_operand.hbm [shape: f32[2,4,256], index: 0, kind: input, shape index: {}]   ;;  %s541_s1 = inlined_call_operand.hbm [shape: f32[2,2,4], index: 1, kind: output, shape index: {}]  }
   0x1   :  { %8 = vsyncpa [#allocation3 + $0x1], 0 }
   0x2   :  { %9 = vsyncpa [#allocation4], 0 }
   0x3   :  { %11 = vsyncpa [#allocation4 + $0x1], 0  ;;  %s412_s6 = smov 0   ;;  %s414_s7 = smov 0  }
   0x4   :  { %s416_s8 = smov 0   ;;  %s418_s9 = smov 0  }
   0x5 LB: > { %s433_s10 = sadd.s32 4294967295, %s400_s9   ;;  %s244_s11 = sadd.s32 4294967294, %s400_s9   ;;  %s400_s9 = sphi %s418_s9, %s551_s9   ;;  %s396_s8 = sphi %s416_s8, %s550_s8   ;;  %s392_s7 = sphi %s414_s7, %s549_s7   ;;  %s388_s6 = sphi %s412_s6, %s548_s6  }
   0x6   : > { %s437_s12 = sadd.s32 1, %s400_s9   ;;  %s24_s13 = sadd.s32 1, %s396_s8 }
   0x7   : > { %s21_s14 = ssub.s32 %s400_s9, %s437_s12  ;;  %p31_p0 = scmp.ne.s32.totalorder %s396_s8, %s392_s7 }
   0x8   : > { %p22_p1 = scmp.eq.s32.totalorder %s21_s14, 0  ;;  %p32_p2 = scmp.eq.s32.totalorder %s400_s9, 0 }
   0x9   : > { %p37_p3 = scmp.ne.s32.totalorder %s392_s7, %s388_s6  ;;  %p38_p4 = scmp.eq.s32.totalorder %s433_s10, 0 }
   0xa   : > { %s449_s15 = scalar_select %p22_p1, %s396_s8, %s24_s13  }
   0xb   : > { %p451_p5 = por %p32_p2, %p31_p0  ;;  %p455_p6 = por %p38_p4, %p37_p3 }
   0xc   : > { %p61_p7 = scmp.eq.s32.totalorder %s433_s10, 1  ;;  %p67_p8 = scmp.eq.s32.totalorder %s244_s11, 1 }
   0xd   : > { %p270_p10 = scmp.lt.s32.totalorder %s400_s9, 2  ;;  %s87_s20 = sand.u32 1, %s396_s8  }
   0xe   : > { %p462_p11 = por %p61_p7, %p31_p0  ;;  %p466_p12 = por %p67_p8, %p37_p3 }
   0xf   : > { %s257_s21 = sshll.u32 %s400_s9, 3  ;;  %s247_s22 = sshll.u32 %s87_s20, 3 }
  0x10   : > { %s96_s25 = scalar_lea.hbm %s540_s0, %s257_s21  ;;  %s91_s27 = scalar_lea.vmem [#allocation2], %s247_s22 }
  0x11   : > { %s98_s26 = sshll.u32 %s96_s25, 4  ;;  %s100_s28 = sshll.u32 %s91_s27, 4  ;;  %s99_s26 = int_to_ptr.hbm [resolvable:$true] %s98_s26  ;;  %s101_s28 = int_to_ptr.vmem [resolvable:$true] %s100_s28 }
  0x12   : > { %p477_p13 = pnand %p270_p10, %p451_p5  ;;  %p250_p0 = scmp.ge.s32.totalorder %s400_s9, 1 }
  0x13   : > { %p105_p1 = scmp.lt.s32.totalorder %s400_s9, 3  ;;  %s88_s30 = scalar_lea.sflag [#allocation3], %s87_s20 }
  0x14   : > { %s304_s2 = sshra.s32 %s99_s26, 4  ;;  %p308_p3 = pneg %p477_p13  ;;  %s305_s2 = int_to_ptr.hbm [resolvable:$true] %s304_s2 }
  0x15   : > { %s306_s3 = scalar_lea.hbm %s305_s2, 8  ;;  %s311_s11 = scalar_lea.hbm %s540_s0, 16 }
  0x16   : > { %p307_p2 = scmp.ne.s32.totalorder %s305_s2, %s306_s3  ;;  %p312_p5 = scmp.lt.s32.totalorder %s305_s2, %s540_s0 }
  0x17   : > { %p313_p8 = scmp.lt.s32.totalorder %s311_s11, %s306_s3 }
  0x18   : > { %p309_p4 = pnand %p308_p3, %p307_p2 }
  0x19   : > { %p314_p10 = por %p313_p8, %p312_p5 }
  0x1a   : > { %p310_p7 = pneg %p309_p4 }
  0x1c   : > { %p315_p9 = pnand %p314_p10, %p310_p7 }
  0x1e   : > { %318 = shalt.err (!%p315_p9)
}
  0x1f   : > { %265 = dma.hbm_to_vmem [thread:$0]  (!%p477_p13), %s99_s26, 128, %s101_s28, %s88_s30  }
  0x20   : > { %p106_p2 = pnand %p250_p0, %p105_p1 }
  0x21   : > { %s498_s16 = sand.u32 (!%p106_p2), 1, %s392_s7  }
  0x22   : > { %109 = sbr.rel (%p106_p2) target bundleno = 173 (0xad), region = 24  ;;  %s251_s20 = sshll.u32 (!%p106_p2), %s498_s16, 3 }
  0x23   : > { %s112_s21 = scalar_lea.sflag (!%p106_p2), [#allocation3], %s498_s16  ;;  %s115_s22 = scalar_lea.vmem (!%p106_p2), [#allocation2], %s251_s20 }
  0x27   : > { %379 = dma.done.wait (%p455_p6), %s112_s21, 128  }
  0x28   : > { %381 = vsyncadd (%p455_p6), %s112_s21, 4294967168  ;;  %v135_v0 = vld [vmem:[%s115_s22] sm:$0xf]  ;;  %v136_v1 = vld [vmem:[%s115_s22 + $0x4] sm:$0xf]  ;;  %vm139_vm0 = vcmask 1043456   ;;  %v147_v6 = vlaneseq }
  0x29   : > { %v138_v2 = vadd.f32 %v136_v1, %v135_v0  ;;  %v137_v4 = vmax.f32 %v135_v0, %v136_v1  ;;  %s252_s23 = sshll.u32 %s498_s16, 1  ;;  %s254_s24 = sshll.u32 %s433_s10, 1  ;;  %vm151_vm1 = vcmask 24576  }
  0x2a   : > { %v148_v7 = vand.u32 127, %v147_v6  ;;  %s169_s26 = scalar_lea.hbm %s541_s1, %s254_s24  ;;  %s134_s27 = scalar_lea.vmem [#allocation5], %s252_s23 }
  0x2b   : > { %v143_v3 = vsel %vm139_vm0, %v138_v2, 0.0  ;;  %v140_v5 = vsel %vm139_vm0, %v137_v4, -inf  ;;  %s171_s28 = sshll.u32 %s134_s27, 4  ;;  %s173_s29 = sshll.u32 %s169_s26, 4  ;;  %s172_s28 = int_to_ptr.vmem [resolvable:$true] %s171_s28  ;;  %s174_s29 = int_to_ptr.hbm [resolvable:$true] %s173_s29 }
  0x2c   : > { %144 = vadd.xlane.f32.xlu0 %v143_v3  ;;  %s159_s30 = scalar_lea.sflag [#allocation4], %s498_s16  ;;  %s348_s2 = sshra.s32 %s174_s29, 4  ;;  %s349_s2 = int_to_ptr.hbm [resolvable:$true] %s348_s2 }
  0x2d   : > { %s350_s10 = scalar_lea.hbm %s349_s2, 2  ;;  %s354_s5 = scalar_lea.hbm %s541_s1, 4 }
  0x2e   : > { %p351_p6 = scmp.ne.s32.totalorder %s349_s2, %s350_s10  ;;  %p355_p0 = scmp.lt.s32.totalorder %s349_s2, %s541_s1 }
  0x2f   : > { %p356_p1 = scmp.lt.s32.totalorder %s354_s5, %s350_s10 }
  0x30   : > { %p352_p9 = pnand %p351_p6, %p462_p11 }
  0x31   : > { %p357_p3 = por %p356_p1, %p355_p0 }
  0x32   : > { %p353_p13 = pneg %p352_p9 }
  0x34   : > { %141 = vmax.xlane.f32.xlu0 %v140_v5  ;;  %p358_p4 = pnand %p357_p3, %p353_p13 }
  0x9f   : > { %v145_v8 = vpop.xlane.xlu0 %144 }
  0xa0   : > { %v153_v9 = vmul.f32 0.00390625, %v145_v8 }
  0xa2   : > { %v155_v10 = vperm.slane %v153_v9, %v148_v7 }
  0xa4   : > { %157 = vst.msk [vmem:[%s134_s27 + $0x1] sm:$0x1] %vm151_vm1, %v155_v10 }
  0xa7   : > { %v142_v11 = vpop.xlane.xlu0 %141 }
  0xa8   : > { %v149_v12 = vperm.slane %v142_v11, %v148_v7 }
  0xaa   : > { %152 = vst.msk [vmem:[%s134_s27] sm:$0x1] %vm151_vm1, %v149_v12 }
  0xab   : > { %361 = shalt.err (!%p358_p4)
}
  0xac   : > { %260 = dma.vmem_to_hbm [thread:$0]  (%p462_p11), %s172_s28, 32, %s174_s29, %s159_s30  }
  0xad PF: > { %s185_s14 = sand.u32 1, %s388_s6   ;;  %p547_p7 = scmp.ge.s32.totalorder %s400_s9, 2 }
  0xae   : > { %s186_s16 = scalar_lea.sflag [#allocation4], %s185_s14 }
  0xaf   : > { %p267_p5 = pnand %p547_p7, %p466_p12 }
  0xb1   : > { %p268_p8 = pneg %p267_p5 }
  0xb3   : > { %383 = dma.done.wait (%p268_p8), %s186_s16, 32  }
  0xb4   : > { %385 = vsyncadd (%p268_p8), %s186_s16, 4294967264  ;;  %p14_p10 = scmp.ge.s32.totalorder %s437_s12, 4   ;;  %s548_s6 = smov %s392_s7 }
  0xb5   : > { %s549_s7 = smov %s396_s8  ;;  %s550_s8 = smov %s449_s15 }
  0xb6   : > { %s551_s9 = smov %s437_s12  ;;  %16 = sbr.rel (!%p14_p10) target bundleno = 5 (0x5), region = 69 }
  0xbb   :  { %192 = vsyncpa [#allocation3], 1 }
  0xbc   :  { %194 = vsyncpa [#allocation3 + $0x1], 1 }
  0xbd   :  { %195 = vsyncpa [#allocation4], 1 }
  0xbe   :  { %197 = vsyncpa [#allocation4 + $0x1], 1 }

</bundles_post_ra>
